<compile_context>
chip_gen: v7x
topology: tpu7x:2x2x1
jax: 0.10.0
libtpu: 0.0.40
codegen_flags: <defaults>
</compile_context>

<pallas_src>
import functools

import jax
import jax.numpy as jnp
from jax.experimental import pallas as pl
from jax.experimental.pallas import tpu as pltpu

_LANES = 128


def _triplet_loss_kernel(slab_ref, o_ref, *, margin):
    # slab_ref: (3, rows, 128) — [anchor, positive, negative], native dtype.
    # Single cast site (in-kernel).
    a = slab_ref[0].astype(jnp.float32)
    p = slab_ref[1].astype(jnp.float32)
    n = slab_ref[2].astype(jnp.float32)

    # Bind the differences once (guaranteed single subtract per element).
    d_p = a - p
    d_n = a - n

    dp = jnp.sqrt(jnp.sum(d_p * d_p))
    dn = jnp.sqrt(jnp.sum(d_n * d_n))

    # losses = relu(dp - dn + margin) is a scalar, so mean() == sum().
    o_ref[0, 0] = jnp.maximum(dp - dn + jnp.float32(margin), jnp.float32(0.0))


def triplet_loss(anchor, positive, negative, margin, size_average=True):
    """anchor/positive/negative: 1-D vectors of length N (any N; padded to 128)."""
    (n,) = anchor.shape
    padded = pl.cdiv(n, _LANES) * _LANES
    rows = padded // _LANES

    def to_rows(v):
        if padded != n:
            v = jnp.pad(v, (0, padded - n))  # zero pad: neutral for sq-diff sums
        return v.reshape(rows, _LANES)

    # One sublane-dense slab, one input DMA, native dtype (cast is in-kernel).
    slab = jnp.stack([to_rows(anchor), to_rows(positive), to_rows(negative)])

    out = pl.pallas_call(
        functools.partial(_triplet_loss_kernel, margin=float(margin)),
        out_shape=jax.ShapeDtypeStruct((1, 1), jnp.float32),
        # Whole slab fits comfortably in VMEM: single grid point, full block.
        in_specs=[pl.BlockSpec(memory_space=pltpu.MemorySpace.VMEM)],
        out_specs=pl.BlockSpec(memory_space=pltpu.MemorySpace.SMEM),
    )(slab)

    # mean() or sum() of a scalar is the scalar itself (size_average irrelevant).
    return out[0, 0]


def _reference_triplet_loss(anchor, positive, negative, margin):
    dp = jnp.sqrt(jnp.sum((anchor - positive) ** 2))
    dn = jnp.sqrt(jnp.sum((anchor - negative) ** 2))
    return jnp.maximum(dp - dn + margin, 0.0)


if __name__ == "__main__":
    key = jax.random.PRNGKey(0)
    k_a, k_p, k_n = jax.random.split(key, 3)

    N = 512          # embedding length -> (4, 128) sublane-dense per vector
    MARGIN = 1.0

    anchor = jax.random.normal(k_a, (N,), dtype=jnp.float32)
    positive = jax.random.normal(k_p, (N,), dtype=jnp.float32)
    negative = jax.random.normal(k_n, (N,), dtype=jnp.float32)

    loss = triplet_loss(anchor, positive, negative, MARGIN, size_average=True)
    loss = jax.block_until_ready(loss)

    ref = _reference_triplet_loss(anchor, positive, negative, MARGIN)
    assert jnp.allclose(loss, ref, rtol=1e-5, atol=1e-5), (loss, ref)

    print("KERNEL_OK")
</pallas_src>

<mosaic_0001>
module attributes {stable_mosaic.version = 11 : i64} {
  func.func @_triplet_loss_kernel(%arg0: memref<3x4x128xf32, #tpu.memory_space<vmem>>, %arg1: memref<1x1xf32, #tpu.memory_space<smem>>) attributes {dimension_semantics = [], scalar_prefetch = 0 : i64, scratch_operands = 0 : i64, tpu.core_type = #tpu.core_type<tc>} {
    %c0 = arith.constant 0 : index
    %c0_0 = arith.constant 0 : index
    %c0_1 = arith.constant 0 : index
    %0 = vector.load %arg0[%c0, %c0_0, %c0_1] : memref<3x4x128xf32, #tpu.memory_space<vmem>>, vector<1x4x128xf32>
    %1 = vector.shape_cast %0 : vector<1x4x128xf32> to vector<4x128xf32>
    %c1 = arith.constant 1 : index
    %c0_2 = arith.constant 0 : index
    %c0_3 = arith.constant 0 : index
    %2 = vector.load %arg0[%c1, %c0_2, %c0_3] : memref<3x4x128xf32, #tpu.memory_space<vmem>>, vector<1x4x128xf32>
    %3 = vector.shape_cast %2 : vector<1x4x128xf32> to vector<4x128xf32>
    %c2 = arith.constant 2 : index
    %c0_4 = arith.constant 0 : index
    %c0_5 = arith.constant 0 : index
    %4 = vector.load %arg0[%c2, %c0_4, %c0_5] : memref<3x4x128xf32, #tpu.memory_space<vmem>>, vector<1x4x128xf32>
    %5 = vector.shape_cast %4 : vector<1x4x128xf32> to vector<4x128xf32>
    %6 = arith.subf %1, %3 : vector<4x128xf32>
    %7 = arith.subf %1, %5 : vector<4x128xf32>
    %8 = arith.mulf %6, %6 : vector<4x128xf32>
    %9 = vector.shape_cast %8 : vector<4x128xf32> to vector<1x4x128xf32>
    %cst = arith.constant dense<0.000000e+00> : vector<1xf32>
    %10 = vector.multi_reduction <add>, %9, %cst [1, 2] : vector<1x4x128xf32> to vector<1xf32>
    %11 = vector.shape_cast %10 : vector<1xf32> to vector<1x1x1xf32>
    %12 = vector.extract %11[0, 0, 0] : f32 from vector<1x1x1xf32>
    %13 = math.sqrt %12 : f32
    %14 = arith.mulf %7, %7 : vector<4x128xf32>
    %15 = vector.shape_cast %14 : vector<4x128xf32> to vector<1x4x128xf32>
    %cst_6 = arith.constant dense<0.000000e+00> : vector<1xf32>
    %16 = vector.multi_reduction <add>, %15, %cst_6 [1, 2] : vector<1x4x128xf32> to vector<1xf32>
    %17 = vector.shape_cast %16 : vector<1xf32> to vector<1x1x1xf32>
    %18 = vector.extract %17[0, 0, 0] : f32 from vector<1x1x1xf32>
    %19 = math.sqrt %18 : f32
    %20 = arith.subf %13, %19 : f32
    %cst_7 = arith.constant 1.000000e+00 : f32
    %21 = arith.addf %20, %cst_7 : f32
    %cst_8 = arith.constant 0.000000e+00 : f32
    %22 = arith.maximumf %21, %cst_8 : f32
    %c0_9 = arith.constant 0 : index
    %c0_10 = arith.constant 0 : index
    %23 = memref.load %arg1[%c0_9, %c0_10] : memref<1x1xf32, #tpu.memory_space<smem>>
    memref.store %22, %arg1[%c0_9, %c0_10] : memref<1x1xf32, #tpu.memory_space<smem>>
    return
  }
}

</mosaic_0001>

<bundles_post_ra>
// kernel: tpu_custom_call.1
= control target key start
LH: loop header
LB: loop body
LE: loop exit
PB: predicated region body
PF: predicated region fallthrough
CT: control target
= control target key end

     0   :  { %6 = vsyncpa [#allocation3], 0  ;;  %s182_s0 = inlined_call_operand.hbm [shape: f32[3,4,128], index: 0, kind: input, shape index: {}]   ;;  %s183_s1 = inlined_call_operand.hbm [shape: f32[1,1], index: 1, kind: output, shape index: {}]  }
   0x1   :  { %7 = vsyncpa [#allocation4], 0  ;;  %s143_s6 = smov [#allocation2]   ;;  %s107_s10 = scalar_lea.hbm %s182_s0, 192 }
   0x2   :  { %s13_s7 = sshll.u32 %s143_s6, 4  ;;  %p108_p0 = scmp.ne.s32.totalorder %s182_s0, %s107_s10  ;;  %s14_s7 = int_to_ptr.vmem [resolvable:$true] %s13_s7 }
   0x3   :  { %p111_p1 = scmp.lt.u32.totalorder %s107_s10, %s182_s0 }
   0x5   :  { %p113_p2 = pnand %p111_p1, %p108_p0 }
   0x7   :  { %116 = shalt.err (!%p113_p2)
}
   0x8   :  { %s117_s15 = scalar_lea.vmem %s14_s7, 192  ;;  %p122_p4 = scmp.lt.s32.totalorder %s14_s7, %s14_s7 }
   0x9   :  { %p118_p3 = scmp.ne.s32.totalorder %s14_s7, %s117_s15  ;;  %p123_p5 = scmp.lt.s32.totalorder %s117_s15, %s117_s15 }
   0xb   :  { %p124_p6 = por %p123_p5, %p122_p4 }
   0xd   :  { %p125_p7 = pnand %p124_p6, %p118_p3 }
   0xf   :  { %128 = shalt.err (!%p125_p7)
}
  0x10   :  { %s144_s16 = smov 64   ;;  %s145_s17 = smov 4  }
  0x11   :  { %19 = dma.hbm_to_vmem [thread:$0]  %s182_s0, 192, %s14_s7, [#allocation3], %s144_s16, %s144_s16, %s145_s17  }
  0x12   :  { %139 = dma.done.wait [#allocation3], 192  }
  0x13   :  { %140 = vsyncadd [#allocation3], 4294967104  ;;  %v23_v0 = vld [vmem:[#allocation2] sm:$0xf]  ;;  %v25_v1 = vld [vmem:[#allocation2 + $0x4] sm:$0xf] }
  0x14   :  { %v27_v2 = vld [vmem:[#allocation2 + $0x8] sm:$0xf]  ;;  %v28_v3 = vsub.f32 %v23_v0, %v25_v1  ;;  %vm31_vm0 = vcmask 1043456   ;;  %s146_s25 = smov 0.0   ;;  %s129_s29 = scalar_lea.hbm %s183_s1, 16 }
  0x15   :  { %v29_v4 = vsub.f32 %v23_v0, %v27_v2  ;;  %p130_p8 = scmp.ne.s32.totalorder %s183_s1, %s129_s29  ;;  %p133_p9 = scmp.lt.u32.totalorder %s129_s29, %s183_s1 }
  0x16   :  { %v30_v5 = vmul.f32 %v28_v3, %v28_v3 }
  0x17   :  { %v51_v6 = vmul.f32 %v29_v4, %v29_v4  ;;  %p135_p10 = pnand %p133_p9, %p130_p8 }
  0x18   :  { %v32_v7 = vsel %vm31_vm0, %v30_v5, 0.0 }
  0x19   :  { %33 = vadd.xlane.f32.xlu0 %v32_v7  ;;  %v52_v8 = vsel %vm31_vm0, %v51_v6, 0.0 }
  0x1d   :  { %53 = vadd.xlane.f32.xlu0 %v52_v8 }
  0xa6   :  { %v34_v9 = vpop.xlane.xlu0 %33 }
  0xa7   :  { %v35_v10 = vrot.slane %v34_v9, 4 }
  0xa9   :  { %v36_v11 = vadd.f32 %v35_v10, %v34_v9 }
  0xaa   :  { %v54_v16 = vpop.xlane.xlu0 %53 }
  0xab   :  { %v37_v12 = vrot.slane %v36_v11, 2  ;;  %v55_v17 = vrot.slane %v54_v16, 4 }
  0xad   :  { %v38_v13 = vadd.f32 %v37_v12, %v36_v11  ;;  %v56_v18 = vadd.f32 %v55_v17, %v54_v16 }
  0xaf   :  { %v39_v14 = vrot.slane %v38_v13, 1  ;;  %v57_v20 = vrot.slane %v56_v18, 2 }
  0xb1   :  { %v40_v15 = vadd.f32 %v39_v14, %v38_v13  ;;  %v58_v21 = vadd.f32 %v57_v20, %v56_v18 }
  0xb3   :  { %90 = vpush %v40_v15  ;;  %v59_v23 = vrot.slane %v58_v21, 1 }
  0xb5   :  { %v60_v28 = vadd.f32 %v59_v23, %v58_v21 }
  0xe4   :  { %s91_s0 = spop %90 }
  0xe5   :  { %v42_v19 = vstv %s91_s0 }
  0xe6   :  { %103 = vrsqrt.f32 %v42_v19  ;;  %vm45_vm1 = vcmp.eq.f32.partialorder %v42_v19, inf  ;;  %v48_v25 = vand.u32 2147483648, %v42_v19  ;;  %vm47_vm2 = vcmp.eq.f32.partialorder %v42_v19, 0.0 }
  0xf0   :  { %v104_v22 = vpop.eup %103 }
  0xf1   :  { %v44_v24 = vmul.f32 %v104_v22, %v42_v19 }
  0xf3   :  { %v46_v26 = vsel %vm45_vm1, %v42_v19, %v44_v24 }
  0xf4   :  { %v49_v27 = vsel %vm47_vm2, %v48_v25, %v46_v26 }
  0xf5   :  { %92 = vpush %v49_v27 }
  0xf6   :  { %94 = vpush %v60_v28 }
 0x126   :  { %s93_s20 = spop %92 }
 0x127   :  { %s95_s21 = spop %94 }
 0x128   :  { %v62_v29 = vstv %s95_s21 }
 0x129   :  { %105 = vrsqrt.f32 %v62_v29  ;;  %vm65_vm3 = vcmp.eq.f32.partialorder %v62_v29, inf  ;;  %v68_v32 = vand.u32 2147483648, %v62_v29  ;;  %vm67_vm4 = vcmp.eq.f32.partialorder %v62_v29, 0.0 }
 0x133   :  { %v106_v30 = vpop.eup %105 }
 0x134   :  { %v64_v31 = vmul.f32 %v106_v30, %v62_v29 }
 0x136   :  { %v66_v33 = vsel %vm65_vm3, %v62_v29, %v64_v31 }
 0x137   :  { %v69_v34 = vsel %vm67_vm4, %v68_v32, %v66_v33 }
 0x138   :  { %96 = vpush %v69_v34 }
 0x169   :  { %s97_s22 = spop %96 }
 0x16a   :  { %s71_s23 = ssub.f32 %s93_s20, %s97_s22 }
 0x16c   :  { %s72_s24 = sadd.f32 1.0, %s71_s23 }
 0x16e   :  { %s73_s26 = smax.f32 %s146_s25, %s72_s24 }
 0x16f   :  { %75 = sst [smem:[#allocation5]] %s73_s26 }
 0x170   :  { %138 = shalt.err (!%p135_p10)
}
 0x171   :  { %s147_s5 = smov [#allocation5]  }
 0x172   :  { %83 = dma.smem_to_hbm %s147_s5, 16, %s183_s1, [#allocation4]  }
 0x173   :  { %141 = dma.done.wait [#allocation4], 16  }
 0x174   :  { %142 = vsyncadd [#allocation4], 4294967280 }
 0x175   :  { %87 = sfence }
 0x176   :  { %88 = vsyncpa [#allocation3], 1 }
 0x177   :  { %89 = vsyncpa [#allocation4], 1 }

</bundles_post_ra>
